<compile_context>
chip_gen: v7x
topology: tpu7x:2x2x1
jax: 0.10.0
libtpu: 0.0.40
codegen_flags: <defaults>
</compile_context>

<pallas_src>
import functools

import jax
import jax.numpy as jnp
from jax import lax
from jax.experimental import pallas as pl
from jax.experimental.pallas import tpu as pltpu

EPS = 1e-5   # PyTorch BatchNorm2d default eps
LANE = 128   # TPU lane width


def _round_up(n, m):
    return (n + m - 1) // m * m


def _padded_bytes(shape, dtype):
    """Approximate physical VMEM footprint of a tile (lane/sublane padding included)."""
    itemsize = jnp.dtype(dtype).itemsize
    sub = 8 * (4 // itemsize) if itemsize in (1, 2, 4) else 8
    dims = list(shape)
    if dims:
        dims[-1] = _round_up(dims[-1], LANE)
    if len(dims) >= 2:
        dims[-2] = _round_up(dims[-2], sub)
    n = 1
    for d in dims:
        n *= d
    return n * itemsize


def _pick_row_tile(H, W, Kc, cout, cpad, halo, budget_bytes=6 << 20):
    """Largest divisor TH of H whose pass-1 per-step working set fits the budget."""
    for th in range(H, 0, -1):
        if H % th:
            continue
        need = (_padded_bytes(((th + halo) * W, Kc), jnp.bfloat16)   # input tile
                + _padded_bytes((th * W, cout), jnp.bfloat16)        # conv tile
                + _padded_bytes((th * W, cpad), jnp.float32))        # f32 acc scratch
        if need <= budget_bytes:
            return th
    return 1


def _conv_stats_kernel(xw_ref, w_ref, conv_ref, sum_ref, ssq_ref, acc_ref, *, W, TH, KH):
    """3x3 conv on one (TH rows x W) tile as KH accumulating bf16 MXU matmuls with an
    f32 VMEM accumulator, plus per-channel partial sum / sum-of-squares accumulated
    over the row-tile grid axis (per batch image)."""
    @pl.when(pl.program_id(1) == 0)
    def _init():
        sum_ref[...] = jnp.zeros(sum_ref.shape, sum_ref.dtype)
        ssq_ref[...] = jnp.zeros(ssq_ref.shape, ssq_ref.dtype)

    THW = TH * W
    cout = conv_ref.shape[-1]

    # TODO(synk): concatenate the KH taps along K (single K=KH*KW*Cin matmul) to raise
    # MXU occupancy for small Cin on the 256x256 arrays (v6e/v7x).
    acc_ref[...] = jnp.dot(xw_ref[0, 0, pl.ds(0, THW), :], w_ref[0],
                           preferred_element_type=jnp.float32)
    for kh in range(1, KH):  # static unrolled; kh*W is a static sublane offset
        # NOTE: the slice is "free" when kh*W is a multiple of the sublane pack
        # (16 for bf16); true for W multiples of 16, otherwise a minor perf hazard.
        acc_ref[...] += jnp.dot(xw_ref[0, 0, pl.ds(kh * W, THW), :], w_ref[kh],
                                preferred_element_type=jnp.float32)

    acc = acc_ref[...]
    conv_ref[0, 0] = acc[:, :cout].astype(conv_ref.dtype)

    # Per-channel partial sums via VPU/XLU column reduction (rides under the MXU slot);
    # accumulated across the row-tile axis into the per-batch resident block.
    sum_ref[0] = sum_ref[0] + jnp.sum(acc, axis=0, keepdims=True)
    ssq_ref[0] = ssq_ref[0] + jnp.sum(acc * acc, axis=0, keepdims=True)


def _bn_apply_kernel(conv_ref, a_ref, c_ref, out_ref):
    # out = conv * a + c   with per-channel scale/shift
    conv = conv_ref[...].astype(jnp.float32)                    # (1, 1, THW, Cout)
    out_ref[...] = (conv * a_ref[...] + c_ref[...]).astype(out_ref.dtype)


def conv_bn_forward(x_nchw, w, b, gamma, beta, *, kernel_size=3, stride=1,
                    padding=1, eps=EPS, row_tile=None, mxu_dtype=jnp.bfloat16):
    """Forward of ConvBn (Conv2d + training-mode BatchNorm2d)."""
    # Conv bias is exactly cancelled by BN mean-centering (dead work for the output).
    # TODO(synk): if running_mean/running_var buffer updates are ever needed, add the
    # bias back into the returned batch statistics (it shifts the mean).
    del b
    assert stride == 1 and padding == kernel_size // 2, "written for the module defaults"
    B, Cin, H, W = x_nchw.shape
    Cout = w.shape[0]
    KH = KW = kernel_size
    halo = KH - 1
    Kc = KW * Cin
    cpad = _round_up(Cout, LANE)
    f32 = jnp.float32

    TH = row_tile if row_tile is not None else _pick_row_tile(H, W, Kc, Cout, cpad, halo)
    assert H % TH == 0, (H, TH)
    nt = H // TH
    THW = TH * W
    tile_rows = (TH + halo) * W

    # ---- layout glue (plain JAX; pad/concat/gather/cast fuse, emitted directly in bf16) ----
    # TODO(synk): keep the surrounding model NHWC end-to-end to drop the two transposes,
    # and move the KW unroll in-kernel to cut pass-1 input bytes a further ~3x.
    x = jnp.transpose(x_nchw, (0, 2, 3, 1)).astype(f32)                        # (B,H,W,Cin)
    xp = jnp.pad(x, ((0, 0), (padding, padding), (padding, padding), (0, 0)))  # (B,Hp,Wp,Cin)
    xw = jnp.concatenate([xp[:, :, kw:kw + W, :] for kw in range(KW)], axis=-1)  # (B,Hp,W,Kc)
    # Row tiles with a (KH-1)-row halo: overlapping windows are not expressible with
    # Blocked index maps, so the halo is materialized once here (overhead = halo/TH).
    xwt = jnp.stack([xw[:, t * TH:t * TH + TH + halo] for t in range(nt)], axis=1)
    xwt = xwt.reshape(B, nt, tile_rows, Kc).astype(mxu_dtype)

    # (Cout, Cin, KH, KW) -> (KH, KW*Cin, Cout_pad), matching the tap order; lane-dense N.
    wt = jnp.transpose(w, (2, 3, 1, 0)).reshape(KH, Kc, Cout).astype(f32)
    wmat = jnp.pad(wt, ((0, 0), (0, 0), (0, cpad - Cout))).astype(mxu_dtype)

    # Explicit VMEM limits sized to the chosen tiles (double-buffered) + headroom.
    p1_tiles = (_padded_bytes((1, 1, tile_rows, Kc), mxu_dtype)
                + _padded_bytes((KH, Kc, cpad), mxu_dtype)
                + _padded_bytes((1, 1, THW, Cout), mxu_dtype)
                + 2 * _padded_bytes((1, 1, cpad), f32))
    p1_limit = int(min(100 << 20, max(32 << 20,
                       2 * p1_tiles + _padded_bytes((THW, cpad), f32) + (8 << 20))))
    p2_tiles = (_padded_bytes((1, 1, THW, Cout), mxu_dtype)
                + _padded_bytes((1, 1, THW, Cout), x_nchw.dtype)
                + 2 * _padded_bytes((1, Cout), f32))
    p2_limit = int(min(100 << 20, max(32 << 20, 2 * p2_tiles + (8 << 20))))

    # ---- pass 1: conv (bf16 MXU, f32 acc) + per-batch BN partial sums ----
    # Batch axis "parallel" (per-batch accumulator rows => no race, v7x 2-TC sharding);
    # row-tile axis "arbitrary" (resident accumulator across tiles).
    conv_out, csum, cssq = pl.pallas_call(
        functools.partial(_conv_stats_kernel, W=W, TH=TH, KH=KH),
        out_shape=(
            jax.ShapeDtypeStruct((B, nt, THW, Cout), mxu_dtype),
            jax.ShapeDtypeStruct((B, 1, cpad), f32),
            jax.ShapeDtypeStruct((B, 1, cpad), f32),
        ),
        grid=(B, nt),
        in_specs=[
            pl.BlockSpec((1, 1, tile_rows, Kc), lambda i, t: (i, t, 0, 0)),
            pl.BlockSpec((KH, Kc, cpad), lambda i, t: (0, 0, 0)),
        ],
        out_specs=(
            pl.BlockSpec((1, 1, THW, Cout), lambda i, t: (i, t, 0, 0)),
            pl.BlockSpec((1, 1, cpad), lambda i, t: (i, 0, 0)),
            pl.BlockSpec((1, 1, cpad), lambda i, t: (i, 0, 0)),
        ),
        scratch_shapes=[pltpu.VMEM((THW, cpad), f32)],
        compiler_params=pltpu.CompilerParams(
            dimension_semantics=("parallel", "arbitrary"),
            vmem_limit_bytes=p1_limit),
    )(xwt, wmat)

    # ---- fold batch stats into per-channel scale/shift (O(Cout), plain JAX) ----
    count = jnp.asarray(B * H * W, f32)
    tot = jnp.sum(csum, axis=0)[0, :Cout]
    tot2 = jnp.sum(cssq, axis=0)[0, :Cout]
    mean = tot / count
    var = jnp.maximum(tot2 / count - mean * mean, 0.0)   # biased variance (PyTorch BN)
    a_vec = gamma.astype(f32) * lax.rsqrt(var + eps)
    c_vec = beta.astype(f32) - mean * a_vec
    a = a_vec.reshape(1, Cout)
    c = c_vec.reshape(1, Cout)

    # ---- pass 2: out = conv * a + c (memory bound; both grid axes parallel) ----
    y = pl.pallas_call(
        _bn_apply_kernel,
        out_shape=jax.ShapeDtypeStruct((B, nt, THW, Cout), x_nchw.dtype),
        grid=(B, nt),
        in_specs=[
            pl.BlockSpec((1, 1, THW, Cout), lambda i, t: (i, t, 0, 0)),
            pl.BlockSpec((1, Cout), lambda i, t: (0, 0)),
            pl.BlockSpec((1, Cout), lambda i, t: (0, 0)),
        ],
        out_specs=pl.BlockSpec((1, 1, THW, Cout), lambda i, t: (i, t, 0, 0)),
        compiler_params=pltpu.CompilerParams(
            dimension_semantics=("parallel", "parallel"),
            vmem_limit_bytes=p2_limit),
    )(conv_out, a, c)

    out = y.reshape(B, H, W, Cout)          # un-padded Cout written directly by the kernel
    return jnp.transpose(out, (0, 3, 1, 2))  # back to NCHW (module interface)


def conv_bn_reference(x, w, b, gamma, beta):
    """Pure-JAX reference replicating PyTorch ConvBn (training-mode BN) semantics."""
    y = lax.conv_general_dilated(
        x, w, window_strides=(1, 1), padding=((1, 1), (1, 1)),
        dimension_numbers=("NCHW", "OIHW", "NCHW"),
    ) + b.reshape(1, -1, 1, 1)
    mean = jnp.mean(y, axis=(0, 2, 3), keepdims=True)
    var = jnp.mean((y - mean) ** 2, axis=(0, 2, 3), keepdims=True)
    yhat = (y - mean) * lax.rsqrt(var + EPS)
    return yhat * gamma.reshape(1, -1, 1, 1) + beta.reshape(1, -1, 1, 1)


if __name__ == "__main__":
    B, Cin, Cout, H, W = 2, 4, 8, 16, 16

    key = jax.random.PRNGKey(0)
    kx, kw, kb, kg, kbeta = jax.random.split(key, 5)

    # Shapes from ConvBn.__init__:
    #   Conv2d(Cin, Cout, 3, 1, 1): weight (Cout, Cin, 3, 3), bias (Cout,)
    #   BatchNorm2d(Cout): weight/gamma (Cout,), bias/beta (Cout,)
    x = jax.random.normal(kx, (B, Cin, H, W), dtype=jnp.float32)
    w = 0.1 * jax.random.normal(kw, (Cout, Cin, 3, 3), dtype=jnp.float32)
    b = 0.1 * jax.random.normal(kb, (Cout,), dtype=jnp.float32)
    gamma = 1.0 + 0.1 * jax.random.normal(kg, (Cout,), dtype=jnp.float32)
    beta = 0.1 * jax.random.normal(kbeta, (Cout,), dtype=jnp.float32)

    # row_tile=8 forces nt=2 so the halo'd row-tiling and the stats accumulator path
    # are exercised even at this small spatial size.
    out = jax.block_until_ready(conv_bn_forward(x, w, b, gamma, beta, row_tile=8))

    ref = conv_bn_reference(x, w, b, gamma, beta)
    assert out.shape == (B, Cout, H, W), out.shape
    max_err = float(jnp.max(jnp.abs(out - ref)))
    # bf16 MXU operands + bf16 conv intermediate => looser tolerance than the pure-f32 path.
    assert jnp.allclose(out, ref, atol=3e-2, rtol=3e-2), max_err

    print("KERNEL_OK")
</pallas_src>

<mosaic_0001>
module attributes {stable_mosaic.version = 11 : i64} {
  func.func @_conv_stats_kernel(%arg0: i32, %arg1: i32, %arg2: memref<1x1x160x12xbf16, #tpu.memory_space<vmem>>, %arg3: memref<3x12x128xbf16, #tpu.memory_space<vmem>>, %arg4: memref<1x1x128x8xbf16, #tpu.memory_space<vmem>>, %arg5: memref<1x1x128xf32, #tpu.memory_space<vmem>>, %arg6: memref<1x1x128xf32, #tpu.memory_space<vmem>>, %arg7: memref<128x128xf32, #tpu.memory_space<vmem>>) attributes {dimension_semantics = [#tpu.dimension_semantics<parallel>, #tpu.dimension_semantics<arbitrary>], iteration_bounds = array<i64: 2, 2>, scalar_prefetch = 0 : i64, scratch_operands = 1 : i64, tpu.core_type = #tpu.core_type<tc>, window_params = [{transform_indices = @transform_0, window_bounds = array<i64: 1, 1, 160, 12>}, {pipeline_mode = #tpu.pipeline_mode<synchronous>, transform_indices = @transform_1, window_bounds = array<i64: 3, 12, 128>}, {transform_indices = @transform_2, window_bounds = array<i64: 1, 1, 128, 8>}, {transform_indices = @transform_3, window_bounds = array<i64: 1, 1, 128>}, {transform_indices = @transform_4, window_bounds = array<i64: 1, 1, 128>}]} {
    %c0_i32 = arith.constant 0 : i32
    %0 = arith.cmpi eq, %arg1, %c0_i32 : i32
    %1 = arith.extui %0 : i1 to i32
    %c0_i32_0 = arith.constant 0 : i32
    %2 = arith.cmpi ne, %1, %c0_i32_0 : i32
    scf.if %2 {
      %cst_49 = arith.constant 0.000000e+00 : f32
      %48 = vector.broadcast %cst_49 : f32 to vector<1x1x128xf32>
      %c0_50 = arith.constant 0 : index
      %c0_51 = arith.constant 0 : index
      %c0_52 = arith.constant 0 : index
      %49 = vector.load %arg5[%c0_50, %c0_51, %c0_52] : memref<1x1x128xf32, #tpu.memory_space<vmem>>, vector<1x1x128xf32>
      tpu.vector_store %arg5[%c0_50, %c0_51, %c0_52], %48 {strides = array<i32>} : memref<1x1x128xf32, #tpu.memory_space<vmem>>, vector<1x1x128xf32>,
      %cst_53 = arith.constant 0.000000e+00 : f32
      %50 = vector.broadcast %cst_53 : f32 to vector<1x1x128xf32>
      %c0_54 = arith.constant 0 : index
      %c0_55 = arith.constant 0 : index
      %c0_56 = arith.constant 0 : index
      %51 = vector.load %arg6[%c0_54, %c0_55, %c0_56] : memref<1x1x128xf32, #tpu.memory_space<vmem>>, vector<1x1x128xf32>
      tpu.vector_store %arg6[%c0_54, %c0_55, %c0_56], %50 {strides = array<i32>} : memref<1x1x128xf32, #tpu.memory_space<vmem>>, vector<1x1x128xf32>,
    } else {
    }
    %c0 = arith.constant 0 : index
    %c0_1 = arith.constant 0 : index
    %c0_2 = arith.constant 0 : index
    %c0_3 = arith.constant 0 : index
    %3 = vector.load %arg2[%c0, %c0_1, %c0_2, %c0_3] : memref<1x1x160x12xbf16, #tpu.memory_space<vmem>>, vector<1x1x128x12xbf16>
    %4 = vector.shape_cast %3 : vector<1x1x128x12xbf16> to vector<128x12xbf16>
    %c0_4 = arith.constant 0 : index
    %c0_5 = arith.constant 0 : index
    %c0_6 = arith.constant 0 : index
    %5 = vector.load %arg3[%c0_4, %c0_5, %c0_6] : memref<3x12x128xbf16, #tpu.memory_space<vmem>>, vector<1x12x128xbf16>
    %6 = vector.shape_cast %5 : vector<1x12x128xbf16> to vector<12x128xbf16>
    %cst = arith.constant dense<0.000000e+00> : vector<128x128xf32>
    %7 = tpu.matmul %4, %6, %cst {dimension_numbers = #tpu.dot_dimension_numbers<[1], [0], [0], [1], [0, 0, 1, 1], [], []>} : vector<128x12xbf16>, vector<12x128xbf16>, vector<128x128xf32> -> vector<128x128xf32>
    %c0_7 = arith.constant 0 : index
    %c0_8 = arith.constant 0 : index
    %8 = vector.load %arg7[%c0_7, %c0_8] : memref<128x128xf32, #tpu.memory_space<vmem>>, vector<128x128xf32>
    tpu.vector_store %arg7[%c0_7, %c0_8], %7 {strides = array<i32>} : memref<128x128xf32, #tpu.memory_space<vmem>>, vector<128x128xf32>,
    %c0_9 = arith.constant 0 : index
    %c0_10 = arith.constant 0 : index
    %9 = vector.load %arg7[%c0_9, %c0_10] : memref<128x128xf32, #tpu.memory_space<vmem>>, vector<128x128xf32>
    %c0_11 = arith.constant 0 : index
    %c0_12 = arith.constant 0 : index
    %c16 = arith.constant 16 : index
    %c0_13 = arith.constant 0 : index
    %10 = vector.load %arg2[%c0_11, %c0_12, %c16, %c0_13] : memref<1x1x160x12xbf16, #tpu.memory_space<vmem>>, vector<1x1x128x12xbf16>
    %11 = vector.shape_cast %10 : vector<1x1x128x12xbf16> to vector<128x12xbf16>
    %c1 = arith.constant 1 : index
    %c0_14 = arith.constant 0 : index
    %c0_15 = arith.constant 0 : index
    %12 = vector.load %arg3[%c1, %c0_14, %c0_15] : memref<3x12x128xbf16, #tpu.memory_space<vmem>>, vector<1x12x128xbf16>
    %13 = vector.shape_cast %12 : vector<1x12x128xbf16> to vector<12x128xbf16>
    %cst_16 = arith.constant dense<0.000000e+00> : vector<128x128xf32>
    %14 = tpu.matmul %11, %13, %cst_16 {dimension_numbers = #tpu.dot_dimension_numbers<[1], [0], [0], [1], [0, 0, 1, 1], [], []>} : vector<128x12xbf16>, vector<12x128xbf16>, vector<128x128xf32> -> vector<128x128xf32>
    %15 = arith.addf %9, %14 : vector<128x128xf32>
    %c0_17 = arith.constant 0 : index
    %c0_18 = arith.constant 0 : index
    %16 = vector.load %arg7[%c0_17, %c0_18] : memref<128x128xf32, #tpu.memory_space<vmem>>, vector<128x128xf32>
    tpu.vector_store %arg7[%c0_17, %c0_18], %15 {strides = array<i32>} : memref<128x128xf32, #tpu.memory_space<vmem>>, vector<128x128xf32>,
    %c0_19 = arith.constant 0 : index
    %c0_20 = arith.constant 0 : index
    %17 = vector.load %arg7[%c0_19, %c0_20] : memref<128x128xf32, #tpu.memory_space<vmem>>, vector<128x128xf32>
    %c0_21 = arith.constant 0 : index
    %c0_22 = arith.constant 0 : index
    %c32 = arith.constant 32 : index
    %c0_23 = arith.constant 0 : index
    %18 = vector.load %arg2[%c0_21, %c0_22, %c32, %c0_23] : memref<1x1x160x12xbf16, #tpu.memory_space<vmem>>, vector<1x1x128x12xbf16>
    %19 = vector.shape_cast %18 : vector<1x1x128x12xbf16> to vector<128x12xbf16>
    %c2 = arith.constant 2 : index
    %c0_24 = arith.constant 0 : index
    %c0_25 = arith.constant 0 : index
    %20 = vector.load %arg3[%c2, %c0_24, %c0_25] : memref<3x12x128xbf16, #tpu.memory_space<vmem>>, vector<1x12x128xbf16>
    %21 = vector.shape_cast %20 : vector<1x12x128xbf16> to vector<12x128xbf16>
    %cst_26 = arith.constant dense<0.000000e+00> : vector<128x128xf32>
    %22 = tpu.matmul %19, %21, %cst_26 {dimension_numbers = #tpu.dot_dimension_numbers<[1], [0], [0], [1], [0, 0, 1, 1], [], []>} : vector<128x12xbf16>, vector<12x128xbf16>, vector<128x128xf32> -> vector<128x128xf32>
    %23 = arith.addf %17, %22 : vector<128x128xf32>
    %c0_27 = arith.constant 0 : index
    %c0_28 = arith.constant 0 : index
    %24 = vector.load %arg7[%c0_27, %c0_28] : memref<128x128xf32, #tpu.memory_space<vmem>>, vector<128x128xf32>
    tpu.vector_store %arg7[%c0_27, %c0_28], %23 {strides = array<i32>} : memref<128x128xf32, #tpu.memory_space<vmem>>, vector<128x128xf32>,
    %c0_29 = arith.constant 0 : index
    %c0_30 = arith.constant 0 : index
    %25 = vector.load %arg7[%c0_29, %c0_30] : memref<128x128xf32, #tpu.memory_space<vmem>>, vector<128x128xf32>
    %26 = vector.extract_strided_slice %25 {offsets = [0, 0], sizes = [128, 8], strides = [1, 1]} : vector<128x128xf32> to vector<128x8xf32>
    %27 = arith.truncf %26 : vector<128x8xf32> to vector<128x8xbf16>
    %c0_31 = arith.constant 0 : index
    %c0_32 = arith.constant 0 : index
    %c0_33 = arith.constant 0 : index
    %c0_34 = arith.constant 0 : index
    %28 = vector.load %arg4[%c0_31, %c0_32, %c0_33, %c0_34] : memref<1x1x128x8xbf16, #tpu.memory_space<vmem>>, vector<1x1x128x8xbf16>
    %29 = vector.shape_cast %28 : vector<1x1x128x8xbf16> to vector<128x8xbf16>
    %30 = vector.shape_cast %27 : vector<128x8xbf16> to vector<1x1x128x8xbf16>
    tpu.vector_store %arg4[%c0_31, %c0_32, %c0_33, %c0_34], %30 {strides = array<i32>} : memref<1x1x128x8xbf16, #tpu.memory_space<vmem>>, vector<1x1x128x8xbf16>,
    %c0_35 = arith.constant 0 : index
    %c0_36 = arith.constant 0 : index
    %c0_37 = arith.constant 0 : index
    %31 = vector.load %arg5[%c0_35, %c0_36, %c0_37] : memref<1x1x128xf32, #tpu.memory_space<vmem>>, vector<1x1x128xf32>
    %32 = vector.shape_cast %31 : vector<1x1x128xf32> to vector<1x128xf32>
    %cst_38 = arith.constant dense<0.000000e+00> : vector<128xf32>
    %33 = vector.multi_reduction <add>, %25, %cst_38 [0] : vector<128x128xf32> to vector<128xf32>
    %34 = vector.shape_cast %33 : vector<128xf32> to vector<1x128xf32>
    %35 = arith.addf %32, %34 : vector<1x128xf32>
    %c0_39 = arith.constant 0 : index
    %c0_40 = arith.constant 0 : index
    %c0_41 = arith.constant 0 : index
    %36 = vector.load %arg5[%c0_39, %c0_40, %c0_41] : memref<1x1x128xf32, #tpu.memory_space<vmem>>, vector<1x1x128xf32>
    %37 = vector.shape_cast %36 : vector<1x1x128xf32> to vector<1x128xf32>
    %38 = vector.shape_cast %35 : vector<1x128xf32> to vector<1x1x128xf32>
    tpu.vector_store %arg5[%c0_39, %c0_40, %c0_41], %38 {strides = array<i32>} : memref<1x1x128xf32, #tpu.memory_space<vmem>>, vector<1x1x128xf32>,
    %c0_42 = arith.constant 0 : index
    %c0_43 = arith.constant 0 : index
    %c0_44 = arith.constant 0 : index
    %39 = vector.load %arg6[%c0_42, %c0_43, %c0_44] : memref<1x1x128xf32, #tpu.memory_space<vmem>>, vector<1x1x128xf32>
    %40 = vector.shape_cast %39 : vector<1x1x128xf32> to vector<1x128xf32>
    %41 = arith.mulf %25, %25 : vector<128x128xf32>
    %cst_45 = arith.constant dense<0.000000e+00> : vector<128xf32>
    %42 = vector.multi_reduction <add>, %41, %cst_45 [0] : vector<128x128xf32> to vector<128xf32>
    %43 = vector.shape_cast %42 : vector<128xf32> to vector<1x128xf32>
    %44 = arith.addf %40, %43 : vector<1x128xf32>
    %c0_46 = arith.constant 0 : index
    %c0_47 = arith.constant 0 : index
    %c0_48 = arith.constant 0 : index
    %45 = vector.load %arg6[%c0_46, %c0_47, %c0_48] : memref<1x1x128xf32, #tpu.memory_space<vmem>>, vector<1x1x128xf32>
    %46 = vector.shape_cast %45 : vector<1x1x128xf32> to vector<1x128xf32>
    %47 = vector.shape_cast %44 : vector<1x128xf32> to vector<1x1x128xf32>
    tpu.vector_store %arg6[%c0_46, %c0_47, %c0_48], %47 {strides = array<i32>} : memref<1x1x128xf32, #tpu.memory_space<vmem>>, vector<1x1x128xf32>,
    return
  }
  func.func @transform_0(%arg0: i32, %arg1: i32) -> (i32, i32, i32, i32) {
    %c0_i32 = arith.constant 0 : i32
    %c0_i32_0 = arith.constant 0 : i32
    %c0_i32_1 = arith.constant 0 : i32
    return %arg0, %arg1, %c0_i32, %c0_i32_0 : i32, i32, i32, i32
  }
  func.func @transform_1(%arg0: i32, %arg1: i32) -> (i32, i32, i32) {
    %c0_i32 = arith.constant 0 : i32
    %c0_i32_0 = arith.constant 0 : i32
    %c0_i32_1 = arith.constant 0 : i32
    %c0_i32_2 = arith.constant 0 : i32
    return %c0_i32, %c0_i32_0, %c0_i32_1 : i32, i32, i32
  }
  func.func @transform_2(%arg0: i32, %arg1: i32) -> (i32, i32, i32, i32) {
    %c0_i32 = arith.constant 0 : i32
    %c0_i32_0 = arith.constant 0 : i32
    %c0_i32_1 = arith.constant 0 : i32
    return %arg0, %arg1, %c0_i32, %c0_i32_0 : i32, i32, i32, i32
  }
  func.func @transform_3(%arg0: i32, %arg1: i32) -> (i32, i32, i32) {
    %c0_i32 = arith.constant 0 : i32
    %c0_i32_0 = arith.constant 0 : i32
    %c0_i32_1 = arith.constant 0 : i32
    return %arg0, %c0_i32, %c0_i32_0 : i32, i32, i32
  }
  func.func @transform_4(%arg0: i32, %arg1: i32) -> (i32, i32, i32) {
    %c0_i32 = arith.constant 0 : i32
    %c0_i32_0 = arith.constant 0 : i32
    %c0_i32_1 = arith.constant 0 : i32
    return %arg0, %c0_i32, %c0_i32_0 : i32, i32, i32
  }
}

</mosaic_0001>

<bundles_post_ra>
// kernel: tpu_custom_call.1
= control target key start
LH: loop header
LB: loop body
LE: loop exit
PB: predicated region body
PF: predicated region fallthrough
CT: control target
= control target key end

     0   :  { %10 = vsyncpa [#allocation4], 0  ;;  %s2050_s0 = inlined_call_operand.vmem [shape: bf16[2,2,160,12], index: 0, kind: input, shape index: {}]   ;;  %s2051_s1 = inlined_call_operand.vmem [shape: bf16[3,12,128], index: 1, kind: input, shape index: {}]   ;;  %s2052_s2 = inlined_call_operand.vmem [shape: bf16[2,2,128,8], index: 2, kind: output, shape index: {0}]   ;;  %s2053_s3 = inlined_call_operand.hbm [shape: f32[2,1,128], index: 3, kind: output, shape index: {1}]   ;;  %s2054_s4 = inlined_call_operand.hbm [shape: f32[2,1,128], index: 4, kind: output, shape index: {2}]  }
   0x1   :  { %12 = vsyncpa [#allocation4 + $0x1], 0 }
   0x2   :  { %13 = vsyncpa [#allocation6], 0 }
   0x3   :  { %15 = vsyncpa [#allocation6 + $0x1], 0  ;;  %s1766_s15 = smov 0   ;;  %s1768_s16 = smov 0  }
   0x4   :  { %s1770_s17 = smov 0   ;;  %s1772_s18 = smov 0  }
   0x5   :  { %s1774_s19 = smov 0   ;;  %s1776_s20 = smov 0  }
   0x6   :  { %s1778_s21 = smov 0   ;;  %s1780_s22 = smov 0  }
   0x7 LB: > { %2058 = sst [smem:[#allocation9_spill]] %s1728_s20  ;;  %s1284_s23 = sadd.s32 4294967295, %s1736_s22   ;;  %s1736_s22 = sphi %s1780_s22, %s21_s22   ;;  %s1732_s21 = sphi %s1778_s21, %s2069_s21   ;;  %s1728_s20 = sphi %s1776_s20, %s2068_s20   ;;  %s1724_s19 = sphi %s1774_s19, %s2067_s19   ;;  %s1720_s18 = sphi %s1772_s18, %s2066_s18   ;;  %s1716_s17 = sphi %s1770_s17, %s2072_s17   ;;  %s1712_s16 = sphi %s1768_s16, %s2071_s16   ;;  %s1708_s15 = sphi %s1766_s15, %s2070_s15  }
   0x8   : > { %2059 = sst [smem:[#allocation10_spill]] %s1732_s21  ;;  %s1285_s24 = sadd.s32 4294967294, %s1736_s22  }
   0x9   : > { %s30_s25 = sadd.s32 1, %s1728_s20  ;;  %s33_s26 = sadd.s32 1, %s1732_s21 }
   0xa   : > { %p31_p0 = scmp.ge.s32.totalorder %s30_s25, 2  ;;  %p127_p1 = scmp.ne.s32.totalorder %s1716_s17, %s1712_s16 }
   0xb   : > { %p128_p2 = scmp.eq.s32.totalorder %s1284_s23, 3  ;;  %p133_p4 = scmp.ne.s32.totalorder %s1712_s16, %s1708_s15 }
   0xc   : > { %s2074_s25 = smov (%p31_p0, %s30_s25), 0  ;;  %s2076_s26 = smov (!%p31_p0, %s33_s26), %s1732_s21 }
   0xd   : > { %2060 = sst [smem:[#allocation11_spill]] %s2074_s25  ;;  %p1815_p3 = por %p128_p2, %p127_p1 }
   0xe   : > { %p35_p5 = scmp.ge.s32.totalorder %s2076_s26, 2  ;;  %p134_p6 = scmp.eq.s32.totalorder %s1285_s24, 3 }
   0xf   : > { %p1288_p7 = scmp.ge.s32.totalorder %s1736_s22, 1  ;;  %p193_p8 = scmp.lt.s32.totalorder %s1736_s22, 5 }
  0x10   : > { %s2078_s26 = smov (%p35_p5, %s2076_s26), 0  ;;  %p1825_p9 = por %p134_p6, %p133_p4 }
  0x11   : > { %2062 = sst [smem:[#allocation12_spill]] %s2078_s26  ;;  %p194_p10 = pnand %p1288_p7, %p193_p8 }
  0x12   : > { %s114_s29 = ssub.s32 %s1732_s21, %s2078_s26  ;;  %s117_s30 = sadd.s32 1, %s1716_s17 }
  0x13   : > { %p115_p11 = scmp.eq.s32.totalorder %s114_s29, 0  ;;  %197 = sbr.rel (%p194_p10) target bundleno = 361 (0x169), region = 28 }
  0x14   : > { %s1836_s6 = sand.u32 (!%p194_p10), 1, %s1712_s16   ;;  %p235_p12 = scmp.lt.s32.totalorder (!%p194_p10), %s1724_s19, 1 }
  0x15   : > { %s1833_s5 = scalar_select %p115_p11, %s1716_s17, %s117_s30  }
  0x16   : > { %p237_p13 = scmp.lt.s32.totalorder (!%p194_p10), %s1720_s18, 1  ;;  %p1293_p0 = scmp.ne.s32.totalorder (!%p194_p10), %s1720_s18, 0 }
  0x17   : > { %2064 = sst [smem:[#allocation13_spill]] %s1833_s5  ;;  %s1853_s5 = scalar_lea.vmem (!%p194_p10), [#allocation3], %s1836_s6 }
  0x1a   : > { %s236_s7 = scalar_select %p235_p12, %s1724_s19, 1 }
  0x1b   : > { %s238_s10 = scalar_select %p237_p13, %s1720_s18, 1 }
  0x1c   : > { %s1505_s8 = smul.u32 40, %s236_s7  ;;  %s1291_s9 = sshll.u32 %s236_s7, 5  ;;  %v1738_v0 = vmov (!%p1293_p0), 0.0  }
  0x1d   : > { %s1504_s11 = smul.u32 20, %s238_s10  ;;  %s1290_s12 = sshll.u32 %s238_s10, 4  ;;  %258 = vst [vmem:[%s1853_s5] sm:$0x1] (!%p1293_p0), %v1738_v0 }
  0x1e   : > { %s250_s13 = sadd.s32 %s1291_s9, %s1290_s12  ;;  %s1856_s7 = scalar_lea.vmem [#allocation5], %s1836_s6 }
  0x1f   : > { %s241_s14 = sadd.s32 %s1505_s8, %s1504_s11  ;;  %s1292_s23 = sshll.u32 %s250_s13, 2  ;;  %259 = vst [vmem:[%s1856_s7] sm:$0x1] (!%p1293_p0), %v1738_v0 }
  0x20   : > { %s1289_s24 = sshll.u32 %s241_s14, 2  ;;  %s1845_s26 = scalar_lea.vmem %s2052_s2, %s1292_s23 }
  0x21   : > { %s1850_s20 = scalar_lea.vmem %s2050_s0, %s1289_s24  ;;  %257 = sbr.rel (%p1293_p0) target bundleno = 40 (0x28), region = 32 }
  0x28 PF: > { %v1583_v1 = vld [vmem:[%s2051_s1] sm:$0x3f]   ;;  %vm348_vm0 = vcmask 1045504   ;;  %v1584_v3 = vld [vmem:[%s2051_s1 + $0x8] sm:$0x3f]   ;;  %vm323_vm1 = vcmask 97280  }
  0x29   : > { %v1585_v2 = vld [vmem:[%s1850_s20] sm:$0xff]   ;;  %1500 = vmatprep.subr.msk.bf16.mxu1 %vm348_vm0, %v1583_v1  ;;  %v350_v4 = vsel %vm348_vm0, %v1583_v1, 0  ;;  %1501 = vmatprep.subr.msk.bf16.mxu0 %vm348_vm0, %v1584_v3  ;;  %v570_v5 = vsel %vm348_vm0, %v1584_v3, 0  ;;  %v1586_v6 = vld [vmem:[%s1850_s20 + $0x8] sm:$0xff]   ;;  %v1588_v8 = vld [vmem:[%s1850_s20 + $0x10] sm:$0xff]   ;;  %vm1017_vm2 = vcmask 60416  }
  0x2a   : > { %1413 = vmatpush3.bf16.msra.mxu1 %v350_v4  ;;  %1414 = vmatprep.mubr.msk.bf16.mxu1 %vm323_vm1, %v1585_v2  ;;  %v1587_v7 = vld [vmem:[%s1850_s20 + $0x8] sm:$0xff]   ;;  %v1589_v9 = vld [vmem:[%s2051_s1 + $0x10] sm:$0x3f]   ;;  %v1591_v12 = vld [vmem:[%s1850_s20 + $0x18] sm:$0xff]   ;;  %s1140_s11 = sshll.u32 %s1856_s7, 4  ;;  %s1108_s29 = scalar_lea.sflag [#allocation4], %s1836_s6  ;;  %s1975_s11 = int_to_ptr.vmem [resolvable:$true] %s1140_s11 }
  0x2b   : > { %1502 = vmatprep.subr.msk.bf16.mxu1 %vm348_vm0, %v1584_v3  ;;  %1431 = vmatpush3.bf16.msra.mxu0 %v570_v5  ;;  %v1590_v10 = vld [vmem:[%s1850_s20 + $0x10] sm:$0xff]   ;;  %v806_v11 = vsel %vm348_vm0, %v1589_v9, 0  ;;  %v1592_v13 = vld [vmem:[%s1850_s20 + $0x18] sm:$0xff]   ;;  %v1593_v14 = vld [vmem:[%s1850_s20 + $0x20] sm:$0xff]   ;;  %s1739_s8 = smov [#allocation3]  }
  0x2c   : > { %1432 = vmatprep.mubr.msk.bf16.mxu0 %vm323_vm1, %v1586_v6  ;;  %1503 = vmatprep.subr.msk.bf16.mxu0 %vm348_vm0, %v1589_v9  ;;  %v1594_v15 = vld [vmem:[%s1850_s20 + $0x20] sm:$0xff]   ;;  %v1595_v16 = vld [vmem:[%s1850_s20 + $0x10] sm:$0xff]   ;;  %v1596_v17 = vld [vmem:[%s1850_s20 + $0x28] sm:$0xff]   ;;  %s1614_s9 = sshll.u32 %s1739_s8, 4  ;;  %s1615_s9 = int_to_ptr.vmem [resolvable:$false] %s1614_s9 }
  0x2d   : > { %1415 = vmatmul.mubr.msk.bf16.vlgmr.msra.gmra.mrb[0].mxu1 %vm323_vm1, %v1587_v7  ;;  %v1597_v18 = vld [vmem:[%s1850_s20 + $0x18] sm:$0xff]   ;;  %v1598_v19 = vld [vmem:[%s1850_s20 + $0x30] sm:$0xff]   ;;  %v1599_v20 = vld [vmem:[%s1850_s20 + $0x20] sm:$0xff]   ;;  %s1616_s18 = scalar_lea.vmem %s1615_s9, 32 }
  0x2e   : > { %1433 = vmatmul.mubr.msk.bf16.vlgmr.msra.gmra.mrb[0].mxu0 %vm323_vm1, %v1588_v8  ;;  %1467 = vmatpush3.bf16.msra.mxu1 %v570_v5  ;;  %v1600_v21 = vld [vmem:[%s1850_s20 + $0x38] sm:$0xff]   ;;  %v1601_v22 = vld [vmem:[%s1850_s20 + $0x28] sm:$0xff]   ;;  %v1603_v24 = vld [vmem:[%s1850_s20 + $0x30] sm:$0xff]  }
  0x2f   : > { %1449 = vmatpush3.bf16.msra.mxu0 %v806_v11  ;;  %1418 = vmatprep.mubr.msk.bf16.mxu1 %vm323_vm1, %v1590_v10  ;;  %v1602_v23 = vld [vmem:[%s1850_s20 + $0x28] sm:$0xff]   ;;  %v1604_v25 = vld [vmem:[%s1850_s20 + $0x30] sm:$0xff]   ;;  %v1605_v26 = vld [vmem:[%s1850_s20 + $0x38] sm:$0xff]  }
  0x30   : > { %1436 = vmatprep.mubr.msk.bf16.mxu0 %vm323_vm1, %v1591_v12  ;;  %v1606_v27 = vld [vmem:[%s1850_s20 + $0x38] sm:$0xff]   ;;  %v1607_v28 = vld [vmem:[%s1850_s20 + $0x40] sm:$0xff]   ;;  %v1609_v30 = vld [vmem:[%s1850_s20 + $0x48] sm:$0xff]  }
  0x31   : > { %v1608_v29 = vld [vmem:[%s1850_s20 + $0x40] sm:$0xff]   ;;  %s1365_s20 = sshll.u32 %s1724_s19, 4 }
  0x32   : > { %s1965_s14 = scalar_lea.hbm %s2053_s3, %s1365_s20  ;;  %s1973_s24 = scalar_lea.hbm %s2054_s4, %s1365_s20 }
  0x35   : > { %1419 = vmatmul.mubr.msk.bf16.gmra.mrb[4].mxu1 %vm323_vm1, %v1592_v13 }
  0x36   : > { %1437 = vmatmul.mubr.msk.bf16.gmra.mrb[4].mxu0 %vm323_vm1, %v1593_v14  ;;  %1422 = vmatprep.mubr.msk.bf16.mxu1 %vm323_vm1, %v1594_v15 }
  0x37   : > { %1450 = vmatprep.mubr.msk.bf16.mxu0 %vm323_vm1, %v1595_v16 }
  0x3d   : > { %1423 = vmatmul.mubr.msk.bf16.gmra.mrb[8].mxu1 %vm323_vm1, %v1596_v17 }
  0x3e   : > { %1451 = vmatmul.mubr.msk.bf16.vlgmr.msra.gmra.mrb[0].mxu0 %vm323_vm1, %v1597_v18  ;;  %1426 = vmatprep.mubr.msk.bf16.mxu1 %vm323_vm1, %v1598_v19 }
  0x3f   : > { %1454 = vmatprep.mubr.msk.bf16.mxu0 %vm323_vm1, %v1599_v20 }
  0x45   : > { %1427 = vmatmul.mubr.msk.bf16.gmra.mrb[12].mxu1 %vm323_vm1, %v1600_v21 }
  0x46   : > { %1455 = vmatmul.mubr.msk.bf16.gmra.mrb[4].mxu0 %vm323_vm1, %v1601_v22  ;;  %1440 = vmatprep.mubr.msk.bf16.mxu1 %vm323_vm1, %v1602_v23 }
  0x47   : > { %1458 = vmatprep.mubr.msk.bf16.mxu0 %vm323_vm1, %v1603_v24 }
  0x4d   : > { %1441 = vmatmul.mubr.msk.bf16.vlgmr.msra.gmra.mrb[8].mxu1 %vm323_vm1, %v1604_v25 }
  0x4e   : > { %1459 = vmatmul.mubr.msk.bf16.gmra.mrb[8].mxu0 %vm323_vm1, %v1605_v26  ;;  %1444 = vmatprep.mubr.msk.bf16.mxu1 %vm323_vm1, %v1606_v27 }
  0x4f   : > { %1462 = vmatprep.mubr.msk.bf16.mxu0 %vm323_vm1, %v1607_v28 }
  0x55   : > { %1445 = vmatmul.mubr.msk.bf16.gmra.mrb[12].mxu1 %vm323_vm1, %v1608_v29 }
  0x56   : > { %1463 = vmatmul.mubr.msk.bf16.gmra.mrb[12].mxu0 %vm323_vm1, %v1609_v30 }
 0x100   : > { %v1416_v31 = vpop.f32.mrb[0].mxu1 }
 0x101   : > { %v386_v32 = vpop.f32.mrb[1].mxu1 }
 0x102   : > { %v1417_v33 = vpop.f32.mrb[2].mxu1 }
 0x103   : > { %v389_v34 = vpop.f32.mrb[3].mxu1 }
 0x108   : > { %v1420_v35 = vpop.f32.mrb[4].mxu1 }
 0x109   : > { %v402_v36 = vpop.f32.mrb[5].mxu1 }
 0x10a   : > { %v1421_v37 = vpop.f32.mrb[6].mxu1 }
 0x10b   : > { %v405_v38 = vpop.f32.mrb[7].mxu1 }
 0x111   : > { %v1452_v39 = vpop.f32.mrb[0].mxu0 }
 0x112   : > { %v1468_v40 = vadd.f32 %v1452_v39, %v1416_v31  ;;  %v842_v41 = vpop.f32.mrb[1].mxu0 }
 0x113   : > { %v1469_v42 = vadd.f32 %v842_v41, %v386_v32  ;;  %v1453_v43 = vpop.f32.mrb[2].mxu0 }
 0x114   : > { %v1371_v44 = vpack.c.bf16 %v1468_v40, %v1468_v40  ;;  %v1470_v45 = vadd.f32 %v1453_v43, %v1417_v33  ;;  %v845_v46 = vpop.f32.mrb[3].mxu0  ;;  %v1061_v54 = vmul.f32 %v1468_v40, %v1468_v40 }
 0x115   : > { %v1369_v47 = vpack.c.bf16 %v1469_v42, %v1469_v42  ;;  %v1471_v48 = vadd.f32 %v845_v46, %v389_v34  ;;  %v1059_v50 = vmul.f32 %v1469_v42, %v1469_v42 }
 0x116   : > { %1020 = vst.msk [vmem:[%s1845_s26 + $0x8] sm:$0xf] %vm1017_vm2, %v1371_v44  ;;  %v1372_v49 = vpack.c.bf16 %v1470_v45, %v1470_v45  ;;  %v1062_v60 = vmul.f32 %v1470_v45, %v1470_v45 }
 0x117   : > { %1018 = vst.msk [vmem:[%s1845_s26] sm:$0xf] %vm1017_vm2, %v1369_v47  ;;  %v1370_v51 = vpack.c.bf16 %v1471_v48, %v1471_v48  ;;  %v1035_v52 = vadd.f32 %v1471_v48, %v1469_v42  ;;  %v1060_v53 = vmul.f32 %v1471_v48, %v1471_v48 }
 0x118   : > { %1021 = vst.msk [vmem:[%s1845_s26 + $0xc] sm:$0xf] %vm1017_vm2, %v1372_v49 }
 0x119   : > { %1019 = vst.msk [vmem:[%s1845_s26 + $0x4] sm:$0xf] %vm1017_vm2, %v1370_v51  ;;  %v1036_v55 = vadd.f32 %v1468_v40, %v1035_v52  ;;  %v1075_v56 = vadd.f32 %v1060_v53, %v1059_v50  ;;  %v1456_v57 = vpop.f32.mrb[4].mxu0 }
 0x11a   : > { %v1472_v58 = vadd.f32 %v1456_v57, %v1420_v35  ;;  %v858_v59 = vpop.f32.mrb[5].mxu0 }
 0x11b   : > { %v1076_v61 = vadd.f32 %v1075_v56, %v1061_v54  ;;  %v1473_v62 = vadd.f32 %v858_v59, %v402_v36  ;;  %v1037_v63 = vadd.f32 %v1470_v45, %v1036_v55  ;;  %v1457_v0 = vpop.f32.mrb[6].mxu0 }
 0x11c   : > { %v1375_v1 = vpack.c.bf16 %v1472_v58, %v1472_v58  ;;  %v1474_v2 = vadd.f32 %v1457_v0, %v1421_v37  ;;  %v861_v3 = vpop.f32.mrb[7].mxu0  ;;  %v1065_v17 = vmul.f32 %v1472_v58, %v1472_v58 }
 0x11d   : > { %v1373_v4 = vpack.c.bf16 %v1473_v62, %v1473_v62  ;;  %v1038_v5 = vadd.f32 %v1473_v62, %v1037_v63  ;;  %v1063_v6 = vmul.f32 %v1473_v62, %v1473_v62  ;;  %v1077_v7 = vadd.f32 %v1076_v61, %v1062_v60 }
 0x11e   : > { %1024 = vst.msk [vmem:[%s1845_s26 + $0x18] sm:$0xf] %vm1017_vm2, %v1375_v1  ;;  %v1376_v8 = vpack.c.bf16 %v1474_v2, %v1474_v2  ;;  %v1475_v9 = vadd.f32 %v861_v3, %v405_v38  ;;  %v1066_v26 = vmul.f32 %v1474_v2, %v1474_v2 }
 0x11f   : > { %1022 = vst.msk [vmem:[%s1845_s26 + $0x10] sm:$0xf] %vm1017_vm2, %v1373_v4  ;;  %v1078_v10 = vadd.f32 %v1077_v7, %v1063_v6 }
 0x120   : > { %1025 = vst.msk [vmem:[%s1845_s26 + $0x1c] sm:$0xf] %vm1017_vm2, %v1376_v8  ;;  %v1374_v11 = vpack.c.bf16 %v1475_v9, %v1475_v9  ;;  %v1039_v12 = vadd.f32 %v1475_v9, %v1038_v5  ;;  %v1064_v13 = vmul.f32 %v1475_v9, %v1475_v9  ;;  %v1442_v14 = vpop.f32.mrb[8].mxu1 }
 0x121   : > { %v1460_v15 = vpop.f32.mrb[8].mxu0  ;;  %v638_v16 = vpop.f32.mrb[9].mxu1 }
 0x122   : > { %1023 = vst.msk [vmem:[%s1845_s26 + $0x14] sm:$0xf] %vm1017_vm2, %v1374_v11  ;;  %v1040_v18 = vadd.f32 %v1472_v58, %v1039_v12  ;;  %v1079_v19 = vadd.f32 %v1078_v10, %v1064_v13  ;;  %v1476_v20 = vadd.f32 %v1460_v15, %v1442_v14  ;;  %v874_v21 = vpop.f32.mrb[9].mxu0  ;;  %v1443_v22 = vpop.f32.mrb[10].mxu1 }
 0x123   : > { %v1477_v23 = vadd.f32 %v874_v21, %v638_v16  ;;  %v1461_v24 = vpop.f32.mrb[10].mxu0  ;;  %v641_v25 = vpop.f32.mrb[11].mxu1 }
 0x124   : > { %v1080_v27 = vadd.f32 %v1079_v19, %v1065_v17  ;;  %v1379_v28 = vpack.c.bf16 %v1476_v20, %v1476_v20  ;;  %v1041_v29 = vadd.f32 %v1474_v2, %v1040_v18  ;;  %v877_v30 = vpop.f32.mrb[11].mxu0  ;;  %v1478_v33 = vadd.f32 %v1461_v24, %v1443_v22  ;;  %v1034_v22 = vld [vmem:[%s1853_s5] sm:$0x1] }
 0x125   : > { %v1377_v31 = vpack.c.bf16 %v1477_v23, %v1477_v23  ;;  %v1067_v32 = vmul.f32 %v1477_v23, %v1477_v23  ;;  %v1479_v34 = vadd.f32 %v877_v30, %v641_v25  ;;  %v1069_v45 = vmul.f32 %v1476_v20, %v1476_v20  ;;  %v1058_v25 = vld [vmem:[%s1856_s7] sm:$0x1] }
 0x126   : > { %1028 = vst.msk [vmem:[%s1845_s26 + $0x28] sm:$0xf] %vm1017_vm2, %v1379_v28  ;;  %v1042_v35 = vadd.f32 %v1477_v23, %v1041_v29  ;;  %v1081_v36 = vadd.f32 %v1080_v27, %v1066_v26  ;;  %v1380_v37 = vpack.c.bf16 %v1478_v33, %v1478_v33  ;;  %v1070_v54 = vmul.f32 %v1478_v33, %v1478_v33 }
 0x127   : > { %1026 = vst.msk [vmem:[%s1845_s26 + $0x20] sm:$0xf] %vm1017_vm2, %v1377_v31  ;;  %v1378_v38 = vpack.c.bf16 %v1479_v34, %v1479_v34  ;;  %v1068_v39 = vmul.f32 %v1479_v34, %v1479_v34 }
 0x128   : > { %v1082_v40 = vadd.f32 %v1081_v36, %v1067_v32  ;;  %v1043_v41 = vadd.f32 %v1479_v34, %v1042_v35  ;;  %v1446_v42 = vpop.f32.mrb[12].mxu1  ;;  %1029 = vst.msk [vmem:[%s1845_s26 + $0x2c] sm:$0xf] %vm1017_vm2, %v1380_v37 }
 0x129   : > { %1027 = vst.msk [vmem:[%s1845_s26 + $0x24] sm:$0xf] %vm1017_vm2, %v1378_v38  ;;  %v1464_v43 = vpop.f32.mrb[12].mxu0  ;;  %v654_v44 = vpop.f32.mrb[13].mxu1 }
 0x12a   : > { %v1044_v46 = vadd.f32 %v1476_v20, %v1043_v41  ;;  %v1083_v47 = vadd.f32 %v1082_v40, %v1068_v39  ;;  %v1480_v48 = vadd.f32 %v1464_v43, %v1446_v42  ;;  %v890_v49 = vpop.f32.mrb[13].mxu0  ;;  %v1447_v50 = vpop.f32.mrb[14].mxu1 }
 0x12b   : > { %v1481_v51 = vadd.f32 %v890_v49, %v654_v44  ;;  %v1465_v52 = vpop.f32.mrb[14].mxu0  ;;  %v657_v53 = vpop.f32.mrb[15].mxu1 }
 0x12c   : > { %v1084_v55 = vadd.f32 %v1083_v47, %v1069_v45  ;;  %v1383_v56 = vpack.c.bf16 %v1480_v48, %v1480_v48  ;;  %v1045_v57 = vadd.f32 %v1478_v33, %v1044_v46  ;;  %v893_v58 = vpop.f32.mrb[15].mxu0  ;;  %v1482_v61 = vadd.f32 %v1465_v52, %v1447_v50 }
 0x12d   : > { %v1381_v59 = vpack.c.bf16 %v1481_v51, %v1481_v51  ;;  %v1071_v60 = vmul.f32 %v1481_v51, %v1481_v51  ;;  %v1483_v62 = vadd.f32 %v893_v58, %v657_v53  ;;  %v1073_v6 = vmul.f32 %v1480_v48, %v1480_v48 }
 0x12e   : > { %1032 = vst.msk [vmem:[%s1845_s26 + $0x38] sm:$0xf] %vm1017_vm2, %v1383_v56  ;;  %v1046_v63 = vadd.f32 %v1481_v51, %v1045_v57  ;;  %v1085_v0 = vadd.f32 %v1084_v55, %v1070_v54  ;;  %v1384_v1 = vpack.c.bf16 %v1482_v61, %v1482_v61  ;;  %v1074_v9 = vmul.f32 %v1482_v61, %v1482_v61 }
 0x12f   : > { %1030 = vst.msk [vmem:[%s1845_s26 + $0x30] sm:$0xf] %vm1017_vm2, %v1381_v59  ;;  %v1382_v2 = vpack.c.bf16 %v1483_v62, %v1483_v62  ;;  %v1072_v3 = vmul.f32 %v1483_v62, %v1483_v62 }
 0x130   : > { %v1086_v4 = vadd.f32 %v1085_v0, %v1071_v60  ;;  %v1047_v5 = vadd.f32 %v1483_v62, %v1046_v63  ;;  %1033 = vst.msk [vmem:[%s1845_s26 + $0x3c] sm:$0xf] %vm1017_vm2, %v1384_v1 }
 0x131   : > { %1031 = vst.msk [vmem:[%s1845_s26 + $0x34] sm:$0xf] %vm1017_vm2, %v1382_v2  ;;  %s1127_s26 = sshll.u32 %s1853_s5, 4  ;;  %s1967_s26 = int_to_ptr.vmem [resolvable:$true] %s1127_s26 }
 0x132   : > { %v1048_v7 = vadd.f32 %v1480_v48, %v1047_v5  ;;  %v1087_v8 = vadd.f32 %v1086_v4, %v1072_v3  ;;  %s1610_s30 = scalar_lea.vmem %s1967_s26, 16  ;;  %p1617_p5 = scmp.lt.s32.totalorder %s1967_s26, %s1615_s9 }
 0x133   : > { %p1611_p1 = scmp.ne.s32.totalorder %s1967_s26, %s1610_s30  ;;  %p1618_p6 = scmp.lt.s32.totalorder %s1616_s18, %s1610_s30 }
 0x134   : > { %v1049_v10 = vadd.f32 %v1482_v61, %v1048_v7  ;;  %v1088_v11 = vadd.f32 %v1087_v8, %v1073_v6 }
 0x135   : > { %p1612_p2 = pnand %p1611_p1, %p1815_p3  ;;  %p1619_p7 = por %p1618_p6, %p1617_p5 }
 0x136   : > { %v1050_v12 = vrot.slane %v1049_v10, 4  ;;  %v1089_v13 = vadd.f32 %v1088_v11, %v1074_v9 }
 0x137   : > { %p1613_p4 = pneg %p1612_p2 }
 0x138   : > { %v1051_v14 = vadd.f32 %v1050_v12, %v1049_v10  ;;  %v1090_v15 = vrot.slane %v1089_v13, 4 }
 0x139   : > { %p1620_p8 = pnand %p1619_p7, %p1613_p4 }
 0x13a   : > { %v1052_v16 = vrot.slane %v1051_v14, 2  ;;  %v1091_v17 = vadd.f32 %v1090_v15, %v1089_v13 }
 0x13c   : > { %v1053_v18 = vadd.f32 %v1052_v16, %v1051_v14  ;;  %v1092_v19 = vrot.slane %v1091_v17, 2 }
 0x13e   : > { %v1054_v20 = vrot.slane %v1053_v18, 1  ;;  %v1093_v21 = vadd.f32 %v1092_v19, %v1091_v17 }
 0x140   : > { %v1055_v23 = vadd.f32 %v1054_v20, %v1053_v18  ;;  %v1094_v24 = vrot.slane %v1093_v21, 1 }
 0x142   : > { %v1056_v26 = vadd.f32 %v1055_v23, %v1034_v22  ;;  %v1095_v27 = vadd.f32 %v1094_v24, %v1093_v21 }
 0x144   : > { %1057 = vst [vmem:[%s1853_s5] sm:$0x1] %v1056_v26  ;;  %v1096_v28 = vadd.f32 %v1095_v27, %v1058_v25 }
 0x145   : > { %1623 = shalt.err (!%p1620_p8)
}
 0x146   : > { %s1624_s5 = scalar_lea.hbm %s1965_s14, 16  ;;  %s1628_s10 = scalar_lea.hbm %s2053_s3, 32 }
 0x147   : > { %p1625_p10 = scmp.ne.s32.totalorder %s1965_s14, %s1624_s5  ;;  %p1629_p13 = scmp.lt.u32.totalorder %s1965_s14, %s2053_s3 }
 0x148   : > { %p1630_p0 = scmp.lt.u32.totalorder %s1628_s10, %s1624_s5  ;;  %p1632_p2 = scmp.lt.u32.totalorder %s1624_s5, %s1965_s14 }
 0x149   : > { %p1626_p11 = pnand %p1625_p10, %p1815_p3 }
 0x14a   : > { %p1631_p1 = por %p1630_p0, %p1629_p13 }
 0x14b   : > { %p1627_p12 = pneg %p1626_p11 }
 0x14c   : > { %p1633_p4 = por %p1632_p2, %p1631_p1 }
 0x14e   : > { %p1634_p5 = pnand %p1633_p4, %p1627_p12 }
 0x150   : > { %1637 = shalt.err (!%p1634_p5)
}
 0x151   : > { %1506 = dma.vmem_to_hbm [thread:$0]  (%p1815_p3), %s1967_s26, 16, %s1965_s14, %s1108_s29   ;;  %1097 = vst [vmem:[%s1856_s7] sm:$0x1] %v1096_v28 }
 0x152   : > { %s1112_s13 = scalar_lea.sflag [#allocation6], %s1836_s6  ;;  %s1638_s19 = scalar_lea.vmem %s1975_s11, 16 }
 0x153   : > { %p1639_p6 = scmp.ne.s32.totalorder %s1975_s11, %s1638_s19  ;;  %s1740_s23 = smov [#allocation5]  }
 0x154   : > { %s1642_s30 = sshll.u32 %s1740_s23, 4  ;;  %s1643_s30 = int_to_ptr.vmem [resolvable:$false] %s1642_s30 }
 0x155   : > { %p1640_p7 = pnand %p1639_p6, %p1815_p3  ;;  %s1644_s8 = scalar_lea.vmem %s1643_s30, 32 }
 0x156   : > { %p1645_p10 = scmp.lt.s32.totalorder %s1975_s11, %s1643_s30  ;;  %p1646_p11 = scmp.lt.s32.totalorder %s1644_s8, %s1638_s19 }
 0x157   : > { %p1641_p8 = pneg %p1640_p7 }
 0x158   : > { %p1647_p12 = por %p1646_p11, %p1645_p10 }
 0x15a   : > { %p1648_p13 = pnand %p1647_p12, %p1641_p8 }
 0x15c   : > { %1651 = shalt.err (!%p1648_p13)
}
 0x15d   : > { %s1652_s6 = scalar_lea.hbm %s1973_s24, 16  ;;  %s1656_s14 = scalar_lea.hbm %s2054_s4, 32 }
 0x15e   : > { %p1653_p0 = scmp.ne.s32.totalorder %s1973_s24, %s1652_s6  ;;  %p1657_p4 = scmp.lt.u32.totalorder %s1973_s24, %s2054_s4 }
 0x15f   : > { %p1658_p5 = scmp.lt.u32.totalorder %s1656_s14, %s1652_s6  ;;  %p1660_p7 = scmp.lt.u32.totalorder %s1652_s6, %s1973_s24 }
 0x160   : > { %p1654_p1 = pnand %p1653_p0, %p1815_p3 }
 0x161   : > { %p1659_p6 = por %p1658_p5, %p1657_p4 }
 0x162   : > { %p1655_p2 = pneg %p1654_p1 }
 0x163   : > { %p1661_p8 = por %p1660_p7, %p1659_p6 }
 0x165   : > { %p1662_p10 = pnand %p1661_p8, %p1655_p2 }
 0x167   : > { %1665 = shalt.err (!%p1662_p10)
}
 0x168   : > { %1507 = dma.vmem_to_hbm [thread:$0]  (%p1815_p3), %s1975_s11, 16, %s1973_s24, %s1112_s13  }
 0x169 PF: > { %p1517_p11 = scmp.ge.s32.totalorder %s1736_s22, 2  ;;  %s1164_s18 = sand.u32 1, %s1708_s15  }
 0x16a   : > { %s1165_s5 = scalar_lea.sflag [#allocation4], %s1164_s18 }
 0x16b   : > { %p1511_p12 = pnand %p1517_p11, %p1825_p9 }
 0x16d   : > { %1699 = dma.done.wait (!%p1511_p12), %s1165_s5, 16  }
 0x16e   : > { %1701 = vsyncadd (!%p1511_p12), %s1165_s5, 4294967280  ;;  %s1173_s21 = scalar_lea.sflag [#allocation6], %s1164_s18 }
 0x16f   : > { %1703 = dma.done.wait (!%p1511_p12), %s1173_s21, 16  }
 0x170   : > { %1705 = vsyncadd (!%p1511_p12), %s1173_s21, 4294967280  ;;  %s21_s22 = sadd.s32 1, %s1736_s22   ;;  %s2065_s27 = sld [smem:[#allocation13_spill]] }
 0x171   : > { %p18_p13 = scmp.ge.s32.totalorder %s21_s22, 6   ;;  %s2066_s18 = sld [smem:[#allocation9_spill]] }
 0x172   : > { %s2067_s19 = sld [smem:[#allocation10_spill]]  ;;  %s2068_s20 = sld [smem:[#allocation11_spill]] }
 0x173   : > { %s2069_s21 = sld [smem:[#allocation12_spill]]  ;;  %s2070_s15 = smov %s1712_s16 }
 0x174   : > { %s2071_s16 = smov %s1716_s17  ;;  %20 = sbr.rel (!%p18_p13) target bundleno = 7 (0x7), region = 98 }
 0x176   : > { %s2072_s17 = smov %s2065_s27 }
 0x17b   :  { %1177 = vsyncpa [#allocation4], 1 }
 0x17c   :  { %1179 = vsyncpa [#allocation4 + $0x1], 1 }
 0x17d   :  { %1180 = vsyncpa [#allocation6], 1 }
 0x17e   :  { %1182 = vsyncpa [#allocation6 + $0x1], 1 }

</bundles_post_ra>
